<compile_context>
chip_gen: v7x
topology: tpu7x:2x2x1
jax: 0.10.0
libtpu: 0.0.40
codegen_flags: <defaults>
</compile_context>

<pallas_src>
import jax
import jax.numpy as jnp
from jax import lax
from jax.experimental import pallas as pl
from jax.experimental.pallas import tpu as pltpu

EMBED_SIZE = 10  # sizes['random']


def _embed_gather_kernel(ids_ref, table_ref, out_ref):
    # ids_ref:   (N_pad,) int32 in SMEM (scalar prefetch)
    # table_ref: (V, E)   float32 in VMEM, resident across the whole grid
    # out_ref:   (TN, E)  float32 VMEM output block for this grid step
    tn = out_ref.shape[0]
    v = table_ref.shape[0]
    base = pl.program_id(0) * tn

    def body(r, carry):
        idx = ids_ref[base + r]
        # Clamp so a bad id cannot read outside the table (torch would raise;
        # here we pick the nearest valid row instead of returning garbage).
        idx = jnp.clip(idx, 0, v - 1)
        out_ref[pl.ds(r, 1), :] = table_ref[pl.ds(idx, 1), :]
        return carry

    lax.fori_loop(0, tn, body, 0, unroll=(tn <= 64))


def rand_embed_forward(batch_ids, embedding_table, *, block_tokens=128):
    """batch_ids: (B, S) integer token ids; embedding_table: (V, E) float32."""
    B, S = batch_ids.shape
    V, E = embedding_table.shape
    N = B * S

    # Rows-per-grid-step; keep the sublane dim a multiple of 8 when tiling.
    tn = int(min(block_tokens, N))
    if tn < N:
        tn = max(8, (tn // 8) * 8)
    num_blocks = pl.cdiv(N, tn)
    n_pad = num_blocks * tn

    ids_flat = batch_ids.reshape(N).astype(jnp.int32)
    if n_pad != N:
        ids_flat = jnp.pad(ids_flat, (0, n_pad - N))

    grid_spec = pltpu.PrefetchScalarGridSpec(
        num_scalar_prefetch=1,                 # ids -> SMEM
        grid=(num_blocks,),
        in_specs=[
            # Full table, same block every step -> stays resident in VMEM.
            pl.BlockSpec((V, E), lambda i, ids: (0, 0)),
        ],
        out_specs=pl.BlockSpec((tn, E), lambda i, ids: (i, 0)),
    )

    # Pure gather: ~zero FLOPs; bytes = output + table + ids.
    cost = pl.CostEstimate(
        flops=0,
        transcendentals=0,
        bytes_accessed=int(4 * (n_pad * E + V * E + n_pad)),
    )

    out_flat = pl.pallas_call(
        _embed_gather_kernel,
        out_shape=jax.ShapeDtypeStruct((n_pad, E), jnp.float32),
        grid_spec=grid_spec,
        compiler_params=pltpu.CompilerParams(
            dimension_semantics=("parallel",),  # v7x: shard token blocks over 2 TCs
        ),
        cost_estimate=cost,
    )(ids_flat, embedding_table)

    # TODO(synk): output last dim is E=10 (<128 lanes) so stores are masked; a
    # fully lane-dense layout would need a wrapper-side repack of 12+ tokens
    # per 128-lane row, which would add HBM bytes for no correctness gain here.
    return out_flat[:N].reshape(B, S, E)


if __name__ == "__main__":
    key = jax.random.PRNGKey(0)
    k_table, k_ids = jax.random.split(key)

    vocab_size = 50
    B, S = 2, 8

    # Deterministic "torch.rand(vocab_size, embed_size)" equivalent: U[0, 1).
    embedding_table = jax.random.uniform(
        k_table, (vocab_size, EMBED_SIZE), dtype=jnp.float32
    )
    batch_ids = jax.random.randint(
        k_ids, (B, S), minval=0, maxval=vocab_size, dtype=jnp.int32
    )

    out = rand_embed_forward(batch_ids, embedding_table, block_tokens=8)
    out = jax.block_until_ready(out)

    # Reference check against plain JAX gather (exact row copies -> exact match).
    ref = embedding_table[batch_ids]
    assert out.shape == (B, S, EMBED_SIZE)
    assert jnp.array_equal(out, ref), "mismatch vs reference gather"

    print("KERNEL_OK")
</pallas_src>

<mosaic_0001>
module attributes {stable_mosaic.version = 11 : i64} {
  func.func @_embed_gather_kernel(%arg0: i32, %arg1: memref<16xi32, #tpu.memory_space<smem>>, %arg2: memref<50x10xf32, #tpu.memory_space<vmem>>, %arg3: memref<8x10xf32, #tpu.memory_space<vmem>>) attributes {dimension_semantics = [#tpu.dimension_semantics<parallel>], iteration_bounds = array<i64: 2>, scalar_prefetch = 1 : i64, scratch_operands = 0 : i64, tpu.core_type = #tpu.core_type<tc>, window_params = [{pipeline_mode = #tpu.pipeline_mode<synchronous>, transform_indices = @transform_0, window_bounds = array<i64: 50, 10>}, {transform_indices = @transform_1, window_bounds = array<i64: 8, 10>}]} {
    %c8_i32 = arith.constant 8 : i32
    %0 = arith.muli %arg0, %c8_i32 : i32
    %c0_i32 = arith.constant 0 : i32
    %1 = arith.addi %0, %c0_i32 : i32
    %2 = arith.index_cast %1 : i32 to index
    %3 = memref.load %arg1[%2] : memref<16xi32, #tpu.memory_space<smem>>
    %c0_i32_0 = arith.constant 0 : i32
    %c49_i32 = arith.constant 49 : i32
    %4 = arith.maxsi %c0_i32_0, %3 : i32
    %5 = arith.minsi %c49_i32, %4 : i32
    %6 = arith.index_cast %5 : i32 to index
    %c0 = arith.constant 0 : index
    %7 = vector.load %arg2[%6, %c0] : memref<50x10xf32, #tpu.memory_space<vmem>>, vector<1x10xf32>
    %8 = arith.index_cast %c0_i32 : i32 to index
    %c0_1 = arith.constant 0 : index
    %9 = vector.load %arg3[%8, %c0_1] : memref<8x10xf32, #tpu.memory_space<vmem>>, vector<1x10xf32>
    tpu.vector_store %arg3[%8, %c0_1], %7 {strides = array<i32>} : memref<8x10xf32, #tpu.memory_space<vmem>>, vector<1x10xf32>,
    %c1_i32 = arith.constant 1 : i32
    %10 = arith.addi %0, %c1_i32 : i32
    %11 = arith.index_cast %10 : i32 to index
    %12 = memref.load %arg1[%11] : memref<16xi32, #tpu.memory_space<smem>>
    %c0_i32_2 = arith.constant 0 : i32
    %c49_i32_3 = arith.constant 49 : i32
    %13 = arith.maxsi %c0_i32_2, %12 : i32
    %14 = arith.minsi %c49_i32_3, %13 : i32
    %15 = arith.index_cast %14 : i32 to index
    %c0_4 = arith.constant 0 : index
    %16 = vector.load %arg2[%15, %c0_4] : memref<50x10xf32, #tpu.memory_space<vmem>>, vector<1x10xf32>
    %17 = arith.index_cast %c1_i32 : i32 to index
    %c0_5 = arith.constant 0 : index
    %18 = vector.load %arg3[%17, %c0_5] : memref<8x10xf32, #tpu.memory_space<vmem>>, vector<1x10xf32>
    tpu.vector_store %arg3[%17, %c0_5], %16 {strides = array<i32>} : memref<8x10xf32, #tpu.memory_space<vmem>>, vector<1x10xf32>,
    %c2_i32 = arith.constant 2 : i32
    %19 = arith.addi %0, %c2_i32 : i32
    %20 = arith.index_cast %19 : i32 to index
    %21 = memref.load %arg1[%20] : memref<16xi32, #tpu.memory_space<smem>>
    %c0_i32_6 = arith.constant 0 : i32
    %c49_i32_7 = arith.constant 49 : i32
    %22 = arith.maxsi %c0_i32_6, %21 : i32
    %23 = arith.minsi %c49_i32_7, %22 : i32
    %24 = arith.index_cast %23 : i32 to index
    %c0_8 = arith.constant 0 : index
    %25 = vector.load %arg2[%24, %c0_8] : memref<50x10xf32, #tpu.memory_space<vmem>>, vector<1x10xf32>
    %26 = arith.index_cast %c2_i32 : i32 to index
    %c0_9 = arith.constant 0 : index
    %27 = vector.load %arg3[%26, %c0_9] : memref<8x10xf32, #tpu.memory_space<vmem>>, vector<1x10xf32>
    tpu.vector_store %arg3[%26, %c0_9], %25 {strides = array<i32>} : memref<8x10xf32, #tpu.memory_space<vmem>>, vector<1x10xf32>,
    %c3_i32 = arith.constant 3 : i32
    %28 = arith.addi %0, %c3_i32 : i32
    %29 = arith.index_cast %28 : i32 to index
    %30 = memref.load %arg1[%29] : memref<16xi32, #tpu.memory_space<smem>>
    %c0_i32_10 = arith.constant 0 : i32
    %c49_i32_11 = arith.constant 49 : i32
    %31 = arith.maxsi %c0_i32_10, %30 : i32
    %32 = arith.minsi %c49_i32_11, %31 : i32
    %33 = arith.index_cast %32 : i32 to index
    %c0_12 = arith.constant 0 : index
    %34 = vector.load %arg2[%33, %c0_12] : memref<50x10xf32, #tpu.memory_space<vmem>>, vector<1x10xf32>
    %35 = arith.index_cast %c3_i32 : i32 to index
    %c0_13 = arith.constant 0 : index
    %36 = vector.load %arg3[%35, %c0_13] : memref<8x10xf32, #tpu.memory_space<vmem>>, vector<1x10xf32>
    tpu.vector_store %arg3[%35, %c0_13], %34 {strides = array<i32>} : memref<8x10xf32, #tpu.memory_space<vmem>>, vector<1x10xf32>,
    %c4_i32 = arith.constant 4 : i32
    %37 = arith.addi %0, %c4_i32 : i32
    %38 = arith.index_cast %37 : i32 to index
    %39 = memref.load %arg1[%38] : memref<16xi32, #tpu.memory_space<smem>>
    %c0_i32_14 = arith.constant 0 : i32
    %c49_i32_15 = arith.constant 49 : i32
    %40 = arith.maxsi %c0_i32_14, %39 : i32
    %41 = arith.minsi %c49_i32_15, %40 : i32
    %42 = arith.index_cast %41 : i32 to index
    %c0_16 = arith.constant 0 : index
    %43 = vector.load %arg2[%42, %c0_16] : memref<50x10xf32, #tpu.memory_space<vmem>>, vector<1x10xf32>
    %44 = arith.index_cast %c4_i32 : i32 to index
    %c0_17 = arith.constant 0 : index
    %45 = vector.load %arg3[%44, %c0_17] : memref<8x10xf32, #tpu.memory_space<vmem>>, vector<1x10xf32>
    tpu.vector_store %arg3[%44, %c0_17], %43 {strides = array<i32>} : memref<8x10xf32, #tpu.memory_space<vmem>>, vector<1x10xf32>,
    %c5_i32 = arith.constant 5 : i32
    %46 = arith.addi %0, %c5_i32 : i32
    %47 = arith.index_cast %46 : i32 to index
    %48 = memref.load %arg1[%47] : memref<16xi32, #tpu.memory_space<smem>>
    %c0_i32_18 = arith.constant 0 : i32
    %c49_i32_19 = arith.constant 49 : i32
    %49 = arith.maxsi %c0_i32_18, %48 : i32
    %50 = arith.minsi %c49_i32_19, %49 : i32
    %51 = arith.index_cast %50 : i32 to index
    %c0_20 = arith.constant 0 : index
    %52 = vector.load %arg2[%51, %c0_20] : memref<50x10xf32, #tpu.memory_space<vmem>>, vector<1x10xf32>
    %53 = arith.index_cast %c5_i32 : i32 to index
    %c0_21 = arith.constant 0 : index
    %54 = vector.load %arg3[%53, %c0_21] : memref<8x10xf32, #tpu.memory_space<vmem>>, vector<1x10xf32>
    tpu.vector_store %arg3[%53, %c0_21], %52 {strides = array<i32>} : memref<8x10xf32, #tpu.memory_space<vmem>>, vector<1x10xf32>,
    %c6_i32 = arith.constant 6 : i32
    %55 = arith.addi %0, %c6_i32 : i32
    %56 = arith.index_cast %55 : i32 to index
    %57 = memref.load %arg1[%56] : memref<16xi32, #tpu.memory_space<smem>>
    %c0_i32_22 = arith.constant 0 : i32
    %c49_i32_23 = arith.constant 49 : i32
    %58 = arith.maxsi %c0_i32_22, %57 : i32
    %59 = arith.minsi %c49_i32_23, %58 : i32
    %60 = arith.index_cast %59 : i32 to index
    %c0_24 = arith.constant 0 : index
    %61 = vector.load %arg2[%60, %c0_24] : memref<50x10xf32, #tpu.memory_space<vmem>>, vector<1x10xf32>
    %62 = arith.index_cast %c6_i32 : i32 to index
    %c0_25 = arith.constant 0 : index
    %63 = vector.load %arg3[%62, %c0_25] : memref<8x10xf32, #tpu.memory_space<vmem>>, vector<1x10xf32>
    tpu.vector_store %arg3[%62, %c0_25], %61 {strides = array<i32>} : memref<8x10xf32, #tpu.memory_space<vmem>>, vector<1x10xf32>,
    %c7_i32 = arith.constant 7 : i32
    %64 = arith.addi %0, %c7_i32 : i32
    %65 = arith.index_cast %64 : i32 to index
    %66 = memref.load %arg1[%65] : memref<16xi32, #tpu.memory_space<smem>>
    %c0_i32_26 = arith.constant 0 : i32
    %c49_i32_27 = arith.constant 49 : i32
    %67 = arith.maxsi %c0_i32_26, %66 : i32
    %68 = arith.minsi %c49_i32_27, %67 : i32
    %69 = arith.index_cast %68 : i32 to index
    %c0_28 = arith.constant 0 : index
    %70 = vector.load %arg2[%69, %c0_28] : memref<50x10xf32, #tpu.memory_space<vmem>>, vector<1x10xf32>
    %71 = arith.index_cast %c7_i32 : i32 to index
    %c0_29 = arith.constant 0 : index
    %72 = vector.load %arg3[%71, %c0_29] : memref<8x10xf32, #tpu.memory_space<vmem>>, vector<1x10xf32>
    tpu.vector_store %arg3[%71, %c0_29], %70 {strides = array<i32>} : memref<8x10xf32, #tpu.memory_space<vmem>>, vector<1x10xf32>,
    %c8_i32_30 = arith.constant 8 : i32
    return
  }
  func.func @transform_0(%arg0: i32, %arg1: memref<16xi32, #tpu.memory_space<smem>>) -> (i32, i32) {
    %c0_i32 = arith.constant 0 : i32
    %c0_i32_0 = arith.constant 0 : i32
    %c0_i32_1 = arith.constant 0 : i32
    return %c0_i32, %c0_i32_0 : i32, i32
  }
  func.func @transform_1(%arg0: i32, %arg1: memref<16xi32, #tpu.memory_space<smem>>) -> (i32, i32) {
    %c0_i32 = arith.constant 0 : i32
    %c0_i32_0 = arith.constant 0 : i32
    return %arg0, %c0_i32 : i32, i32
  }
}

</mosaic_0001>

<bundles_post_ra>
// kernel: tpu_custom_call.1
= control target key start
LH: loop header
LB: loop body
LE: loop exit
PB: predicated region body
PF: predicated region fallthrough
CT: control target
= control target key end

     0   :  { %s614_s0 = inlined_call_operand.vmem [shape: s32[16], index: 0, kind: input, shape index: {}]   ;;  %s615_s1 = inlined_call_operand.vmem [shape: f32[50,10], index: 1, kind: input, shape index: {}]   ;;  %s616_s2 = inlined_call_operand.hbm [shape: f32[16,10], index: 2, kind: output, shape index: {}]  }
   0x1   :  { %s7_s11 = sshll.u32 %s614_s0, 4  ;;  %s8_s11 = int_to_ptr.vmem [resolvable:$true] %s7_s11 }
   0x2   :  { %s349_s12 = scalar_lea.vmem %s8_s11, 16  ;;  %p354_p1 = scmp.lt.s32.totalorder %s8_s11, %s8_s11 }
   0x3   :  { %p350_p0 = scmp.ne.s32.totalorder %s8_s11, %s349_s12  ;;  %p355_p2 = scmp.lt.s32.totalorder %s349_s12, %s349_s12 }
   0x5   :  { %p356_p3 = por %p355_p2, %p354_p1 }
   0x7   :  { %p357_p4 = pnand %p356_p3, %p350_p0 }
   0x9   :  { %360 = shalt.err (!%p357_p4)  }
   0xa   :  { %s427_s13 = smov [#allocation3]  }
   0xb   :  { %10 = dma.vmem_to_smem %s8_s11, 16, %s427_s13, [#allocation2] }
   0xc   :  { %405 = dma.done.wait [#allocation2], 16 }
   0xd   :  { %406 = vsyncadd [#allocation2], 4294967280 }
   0xe   :  { %12 = sfence }
   0xf   :  { %13 = vsyncpa [#allocation5], 0 }
  0x10   :  { %15 = vsyncpa [#allocation5 + $0x1], 0  ;;  %s447_s14 = smov 0   ;;  %s449_s15 = smov 0  }
  0x11   :  { %s451_s0 = smov 0   ;;  %s453_s16 = smov 0  }
  0x12 LB: > { %s468_s17 = sadd.s32 4294967295, %s425_s16   ;;  %s244_s18 = sadd.s32 4294967294, %s425_s16   ;;  %s425_s16 = sphi %s453_s16, %s622_s16   ;;  %s421_s0 = sphi %s451_s0, %s621_s0   ;;  %s417_s15 = sphi %s449_s15, %s620_s15   ;;  %s413_s14 = sphi %s447_s14, %s619_s14  }
  0x13   : > { %s472_s19 = sadd.s32 1, %s425_s16   ;;  %s49_s20 = sadd.s32 1, %s421_s0 }
  0x14   : > { %s46_s21 = ssub.s32 %s425_s16, %s472_s19  ;;  %p59_p5 = scmp.ne.s32.totalorder %s421_s0, %s417_s15 }
  0x15   : > { %p47_p6 = scmp.eq.s32.totalorder %s46_s21, 0  ;;  %p60_p7 = scmp.eq.s32.totalorder %s468_s17, 1 }
  0x16   : > { %p65_p8 = scmp.ne.s32.totalorder %s417_s15, %s413_s14  ;;  %p66_p9 = scmp.eq.s32.totalorder %s244_s18, 1 }
  0x17   : > { %s483_s22 = scalar_select %p47_p6, %s421_s0, %s49_s20  }
  0x18   : > { %p485_p10 = por %p60_p7, %p59_p5  ;;  %p489_p11 = por %p66_p9, %p65_p8 }
  0x19   : > { %p246_p12 = scmp.ge.s32.totalorder %s425_s16, 1  ;;  %p87_p13 = scmp.lt.s32.totalorder %s425_s16, 3 }
  0x1b   : > { %p88_p0 = pnand %p246_p12, %p87_p13 }
  0x1c   : > { %s99_s25 = sand.u32 (!%p88_p0), 1, %s417_s15   ;;  %s497_s26 = sshll.u32 (!%p88_p0), %s468_s17, 3  ;;  %vm110_vm0 = vcmask (!%p88_p0), 73728  }
  0x1d   : > { %91 = sbr.rel (%p88_p0) target bundleno = 84 (0x54), region = 24  ;;  %s247_s27 = sshll.u32 (!%p88_p0), %s99_s25, 3 }
  0x1e   : > { %s103_s28 = sld [smem:[#allocation3 + %s497_s26]] (!%p88_p0)  ;;  %s112_s29 = sadd.s32 (!%p88_p0), 1, %s497_s26 }
  0x1f   : > { %s121_s30 = sadd.s32 (!%p88_p0), 2, %s497_s26  ;;  %s113_s3 = sld [smem:[#allocation3 + %s112_s29]] (!%p88_p0) }
  0x20   : > { %s122_s4 = sld [smem:[#allocation3 + %s121_s30]] (!%p88_p0)  ;;  %s130_s5 = sadd.s32 (!%p88_p0), 3, %s497_s26 }
  0x21   : > { %s139_s6 = sadd.s32 (!%p88_p0), 4, %s497_s26  ;;  %s506_s7 = sld [smem:[#allocation3 + %s130_s5]] (!%p88_p0) }
  0x22   : > { %s508_s8 = sld [smem:[#allocation3 + %s139_s6]] (!%p88_p0)  ;;  %s148_s9 = sadd.s32 (!%p88_p0), 5, %s497_s26 }
  0x23   : > { %s157_s10 = sadd.s32 (!%p88_p0), 6, %s497_s26  ;;  %s515_s18 = scalar_lea.vmem (!%p88_p0), [#allocation4], %s247_s27 }
  0x24   : > { %p104_p1 = scmp.gt.s32.totalorder %s103_s28, 0  ;;  %p249_p2 = scmp.lt.s32.totalorder %s103_s28, 49 }
  0x25   : > { %p114_p3 = scmp.gt.s32.totalorder %s113_s3, 0  ;;  %p254_p4 = scmp.lt.s32.totalorder %s113_s3, 49 }
  0x26   : > { %s624_s28 = smov (!%p104_p1, %s103_s28), 0  ;;  %p123_p5 = scmp.gt.s32.totalorder %s122_s4, 0 }
  0x27   : > { %s626_s28 = smov (!%p249_p2, %s624_s28), 49  ;;  %s628_s3 = smov (!%p114_p3, %s113_s3), 0 }
  0x28   : > { %s108_s13 = scalar_lea.vmem %s615_s1, %s626_s28  ;;  %s630_s3 = smov (!%p254_p4, %s628_s3), 49 }
  0x29   : > { %v109_v0 = vld [vmem:[%s108_s13] sm:$0x1]  ;;  %s124_s20 = scalar_select %p123_p5, %s122_s4, 0 }
  0x2a   : > { %111 = vst.msk [vmem:[%s515_s18] sm:$0x1] %vm110_vm0, %v109_v0  ;;  %s118_s30 = scalar_lea.vmem %s615_s1, %s630_s3  ;;  %p259_p6 = scmp.lt.s32.totalorder %s122_s4, 49 }
  0x2b   : > { %v119_v1 = vld [vmem:[%s118_s30] sm:$0x1]  ;;  %p132_p7 = scmp.gt.s32.totalorder %s506_s7, 0  ;;  %p264_p8 = scmp.lt.s32.totalorder %s506_s7, 49 }
  0x2c   : > { %120 = vst.msk [vmem:[%s515_s18 + $0x1] sm:$0x1] %vm110_vm0, %v119_v1  ;;  %s632_s20 = smov (!%p259_p6, %s124_s20), 49  ;;  %p141_p9 = scmp.gt.s32.totalorder %s508_s8, 0 }
  0x2d   : > { %s634_s7 = smov (!%p132_p7, %s506_s7), 0  ;;  %s127_s5 = scalar_lea.vmem %s615_s1, %s632_s20 }
  0x2e   : > { %v128_v2 = vld [vmem:[%s127_s5] sm:$0x1]  ;;  %s636_s7 = smov (!%p264_p8, %s634_s7), 49  ;;  %p269_p12 = scmp.lt.s32.totalorder %s508_s8, 49 }
  0x2f   : > { %129 = vst.msk [vmem:[%s515_s18 + $0x2] sm:$0x1] %vm110_vm0, %v128_v2  ;;  %s142_s3 = scalar_select %p141_p9, %s508_s8, 0 }
  0x30   : > { %s136_s11 = scalar_lea.vmem %s615_s1, %s636_s7  ;;  %s149_s12 = sld [smem:[#allocation3 + %s148_s9]] }
  0x31   : > { %v137_v3 = vld [vmem:[%s136_s11] sm:$0x1]  ;;  %s158_s13 = sld [smem:[#allocation3 + %s157_s10]]  ;;  %s638_s3 = smov (!%p269_p12, %s142_s3), 49 }
  0x32   : > { %138 = vst.msk [vmem:[%s515_s18 + $0x3] sm:$0x1] %vm110_vm0, %v137_v3  ;;  %s166_s20 = sadd.s32 7, %s497_s26  ;;  %s145_s30 = scalar_lea.vmem %s615_s1, %s638_s3 }
  0x33   : > { %v146_v4 = vld [vmem:[%s145_s30] sm:$0x1]  ;;  %s167_s27 = sld [smem:[#allocation3 + %s166_s20]]  ;;  %s290_s7 = sshll.u32 %s468_s17, 7 }
  0x34   : > { %147 = vst.msk [vmem:[%s515_s18 + $0x4] sm:$0x1] %vm110_vm0, %v146_v4  ;;  %s189_s5 = sshll.u32 %s515_s18, 4  ;;  %s565_s6 = scalar_lea.hbm %s616_s2, %s290_s7  ;;  %s570_s5 = int_to_ptr.vmem [resolvable:$true] %s189_s5 }
  0x35   : > { %s361_s21 = scalar_lea.vmem %s570_s5, 128  ;;  %s428_s29 = smov [#allocation4]  }
  0x36   : > { %p150_p13 = scmp.gt.s32.totalorder %s149_s12, 0  ;;  %p274_p0 = scmp.lt.s32.totalorder %s149_s12, 49 }
  0x37   : > { %p159_p1 = scmp.gt.s32.totalorder %s158_s13, 0  ;;  %p279_p2 = scmp.lt.s32.totalorder %s158_s13, 49 }
  0x38   : > { %s640_s12 = smov (!%p150_p13, %s149_s12), 0  ;;  %p362_p5 = scmp.ne.s32.totalorder %s570_s5, %s361_s21 }
  0x39   : > { %s642_s13 = smov (!%p159_p1, %s158_s13), 0  ;;  %s644_s12 = smov (!%p274_p0, %s640_s12), 49 }
  0x3a   : > { %s646_s13 = smov (!%p279_p2, %s642_s13), 49  ;;  %s154_s9 = scalar_lea.vmem %s615_s1, %s644_s12 }
  0x3b   : > { %p168_p3 = scmp.gt.s32.totalorder %s167_s27, 0  ;;  %v155_v5 = vld [vmem:[%s154_s9] sm:$0x1]  ;;  %s163_s28 = scalar_lea.vmem %s615_s1, %s646_s13 }
  0x3c   : > { %p284_p4 = scmp.lt.s32.totalorder %s167_s27, 49  ;;  %156 = vst.msk [vmem:[%s515_s18 + $0x5] sm:$0x1] %vm110_vm0, %v155_v5  ;;  %v164_v6 = vld [vmem:[%s163_s28] sm:$0x1]  ;;  %s176_s13 = scalar_lea.sflag [#allocation5], %s99_s25 }
  0x3d   : > { %s648_s27 = smov (!%p168_p3, %s167_s27), 0  ;;  %165 = vst.msk [vmem:[%s515_s18 + $0x6] sm:$0x1] %vm110_vm0, %v164_v6  ;;  %p363_p6 = pnand %p362_p5, %p485_p10 }
  0x3e   : > { %s650_s27 = smov (!%p284_p4, %s648_s27), 49  ;;  %s365_s30 = sshll.u32 %s428_s29, 4  ;;  %s366_s30 = int_to_ptr.vmem [resolvable:$false] %s365_s30 }
  0x3f   : > { %s172_s20 = scalar_lea.vmem %s615_s1, %s650_s27  ;;  %p364_p7 = pneg %p363_p6 }
  0x40   : > { %v173_v7 = vld [vmem:[%s172_s20] sm:$0x1]  ;;  %s367_s7 = scalar_lea.vmem %s366_s30, 256  ;;  %p368_p8 = scmp.lt.s32.totalorder %s570_s5, %s366_s30 }
  0x41   : > { %174 = vst.msk [vmem:[%s515_s18 + $0x7] sm:$0x1] %vm110_vm0, %v173_v7  ;;  %p369_p9 = scmp.lt.s32.totalorder %s367_s7, %s361_s21 }
  0x43   : > { %p370_p12 = por %p369_p9, %p368_p8 }
  0x45   : > { %p371_p13 = pnand %p370_p12, %p364_p7 }
  0x47   : > { %374 = shalt.err (!%p371_p13)
}
  0x48   : > { %s375_s25 = scalar_lea.hbm %s565_s6, 128  ;;  %s379_s26 = scalar_lea.hbm %s616_s2, 256 }
  0x49   : > { %p376_p0 = scmp.ne.s32.totalorder %s565_s6, %s375_s25  ;;  %p380_p3 = scmp.lt.u32.totalorder %s565_s6, %s616_s2 }
  0x4a   : > { %p381_p4 = scmp.lt.u32.totalorder %s379_s26, %s375_s25  ;;  %p383_p6 = scmp.lt.u32.totalorder %s375_s25, %s565_s6 }
  0x4b   : > { %p377_p1 = pnand %p376_p0, %p485_p10 }
  0x4c   : > { %p382_p5 = por %p381_p4, %p380_p3 }
  0x4d   : > { %p378_p2 = pneg %p377_p1 }
  0x4e   : > { %p384_p7 = por %p383_p6, %p382_p5 }
  0x50   : > { %p385_p8 = pnand %p384_p7, %p378_p2 }
  0x52   : > { %388 = shalt.err (!%p385_p8)
}
  0x53   : > { %309 = dma.vmem_to_hbm [thread:$0]  (%p485_p10), %s570_s5, 128, %s565_s6, %s176_s13  }
  0x54 PF: > { %p315_p9 = scmp.ge.s32.totalorder %s425_s16, 2  ;;  %s201_s10 = sand.u32 1, %s413_s14  }
  0x55   : > { %s202_s17 = scalar_lea.sflag [#allocation5], %s201_s10 }
  0x56   : > { %p312_p12 = pnand %p315_p9, %p489_p11 }
  0x58   : > { %408 = dma.done.wait (!%p312_p12), %s202_s17, 128  }
  0x59   : > { %410 = vsyncadd (!%p312_p12), %s202_s17, 4294967168  ;;  %p18_p13 = scmp.ge.s32.totalorder %s472_s19, 4   ;;  %s619_s14 = smov %s417_s15 }
  0x5a   : > { %s620_s15 = smov %s421_s0  ;;  %s621_s0 = smov %s483_s22 }
  0x5b   : > { %s622_s16 = smov %s472_s19  ;;  %20 = sbr.rel (!%p18_p13) target bundleno = 18 (0x12), region = 64 }
  0x62   :  { %207 = vsyncpa [#allocation5], 1 }
  0x63   :  { %209 = vsyncpa [#allocation5 + $0x1], 1 }

</bundles_post_ra>
